<compile_context>
chip_gen: v6e
topology: v6e:2x2x1
jax: 0.10.0
libtpu: 0.0.40
codegen_flags: <defaults>
</compile_context>

<pallas_src>
import math

import jax
import jax.numpy as jnp
from jax.experimental import pallas as pl
from jax.experimental.pallas import tpu as pltpu

BN_EPS = 1e-5          # nn.BatchNorm1d default eps
LANE = 128


def _round_up(x, m):
    return ((x + m - 1) // m) * m


def _cdiv(a, b):
    return -(-a // b)


# -------------------- VMEM sizing --------------------

def _vmem_caps():
    """(budget_bytes, vmem_limit_bytes) derived from the chip generation."""
    try:
        cap = int(getattr(pltpu.get_tpu_info(), "vmem_capacity_bytes", 64 << 20))
    except Exception:
        cap = 64 << 20            # conservative (v7x per-TC size)
    budget = int(cap * 0.65)      # what our tiles/weights may occupy
    limit = int(cap * 0.75)       # scoped limit handed to the compiler
    return budget, limit


def _vmem_need_bytes(pdims, tb, w_bytes, io_buf=2, w_buf=1):
    """Fused-kernel VMEM footprint for batch tile tb (padded feature dims pdims)."""
    weights = sum(pdims[i] * pdims[i + 1] for i in range(len(pdims) - 1)) * w_bytes * w_buf
    biases = sum(pdims[1:]) * 4 * w_buf
    io = io_buf * tb * (pdims[0] + pdims[-1]) * 4          # x / out tiles (f32)
    hidden = sum(tb * d * 4 for d in pdims[1:-1])          # f32 hidden activations
    hidden += tb * max(pdims) * w_bytes                    # low-precision cast copy
    scratch = 4 << 20                                      # compiler scratch headroom
    return weights + biases + io + hidden + scratch


# -------------------- fused whole-MLP kernel --------------------

def _make_fused_mlp_kernel(n_layers, sigmoid, compute_dtype):
    """Refs: (x, w0, b0, w1, b1, ..., out). BN already folded into w/b."""

    def kernel(*refs):
        x_ref = refs[0]
        o_ref = refs[-1]
        h = x_ref[...].astype(jnp.float32)
        for i in range(n_layers):
            w = refs[1 + 2 * i][...]            # compute_dtype (bf16) weights
            b = refs[2 + 2 * i][...]            # f32 bias
            h = jnp.dot(h.astype(compute_dtype), w,
                        preferred_element_type=jnp.float32) + b
            if i < n_layers - 1:
                h = jnp.maximum(h, 0.0)         # ReLU; Dropout is identity in eval mode
        if sigmoid:
            h = jax.nn.sigmoid(h)
        o_ref[...] = h.astype(o_ref.dtype)

    return kernel


def _call_fused(x, weights, biases, *, sigmoid, tb, io_buf, use_pipeline_modes,
                vmem_limit):
    b_pad, din_pad = x.shape
    n_layers = len(weights)
    h_out = weights[-1].shape[1]
    grid = (b_pad // tb,)

    io_mode = pl.Buffered(io_buf) if use_pipeline_modes else None
    w_mode = pl.Buffered(1) if use_pipeline_modes else None   # resident: single buffer

    def _spec(shape, index_map, mode):
        if mode is None:
            return pl.BlockSpec(shape, index_map)
        return pl.BlockSpec(shape, index_map, pipeline_mode=mode)

    in_specs = [_spec((tb, din_pad), lambda i: (i, 0), io_mode)]
    for w, b in zip(weights, biases):
        in_specs.append(_spec(w.shape, lambda i: (0, 0), w_mode))   # VMEM-resident
        in_specs.append(_spec(b.shape, lambda i: (0, 0), w_mode))
    out_spec = _spec((tb, h_out), lambda i: (i, 0), io_mode)

    kernel = _make_fused_mlp_kernel(n_layers, sigmoid, weights[0].dtype)
    args = [x]
    for w, b in zip(weights, biases):
        args += [w, b]

    return pl.pallas_call(
        kernel,
        out_shape=jax.ShapeDtypeStruct((b_pad, h_out), jnp.float32),
        grid=grid,
        in_specs=in_specs,
        out_specs=out_spec,
        compiler_params=pltpu.CompilerParams(
            dimension_semantics=("parallel",),
            vmem_limit_bytes=vmem_limit),
    )(*args)


# -------------------- K/N-tiled per-layer fallback --------------------

def _layer_kernel(relu, sigmoid):
    def kernel(x_ref, w_ref, b_ref, o_ref, acc_ref):
        k = pl.program_id(2)

        @pl.when(k == 0)
        def _():
            acc_ref[...] = jnp.zeros_like(acc_ref)

        acc_ref[...] += jnp.dot(x_ref[...], w_ref[...],
                                preferred_element_type=jnp.float32)

        @pl.when(k == pl.num_programs(2) - 1)
        def _():
            h = acc_ref[...] + b_ref[...]
            if relu:
                h = jnp.maximum(h, 0.0)
            if sigmoid:
                h = jax.nn.sigmoid(h)
            o_ref[...] = h.astype(o_ref.dtype)

    return kernel


def _largest_tile(dim, candidates=(512, 256, 128)):
    for c in candidates:
        if dim >= c and dim % c == 0:
            return c
    return dim   # padded feature dims are multiples of 128, so never below 128


def _tiled_layer(h, w, b, *, tm, relu, sigmoid, out_dtype, vmem_limit):
    M, K = h.shape
    N = w.shape[1]
    tk = _largest_tile(K)
    tn = _largest_tile(N)
    grid = (M // tm, N // tn, K // tk)
    return pl.pallas_call(
        _layer_kernel(relu, sigmoid),
        out_shape=jax.ShapeDtypeStruct((M, N), out_dtype),
        grid=grid,
        in_specs=[pl.BlockSpec((tm, tk), lambda i, j, k: (i, k)),
                  pl.BlockSpec((tk, tn), lambda i, j, k: (k, j)),
                  pl.BlockSpec((1, tn), lambda i, j, k: (0, j))],
        out_specs=pl.BlockSpec((tm, tn), lambda i, j, k: (i, j)),
        scratch_shapes=[pltpu.VMEM((tm, tn), jnp.float32)],
        compiler_params=pltpu.CompilerParams(
            dimension_semantics=("parallel", "parallel", "arbitrary"),
            vmem_limit_bytes=vmem_limit),
    )(h, w, b)


def _tiled_mlp(x, weights, biases, *, sigmoid, vmem_limit):
    B = x.shape[0]
    compute_dtype = weights[0].dtype
    sub = 16 if compute_dtype.itemsize == 2 else 8
    tm = 256 if B > 256 else _round_up(B, sub)
    b_pad = _round_up(B, tm)
    h = x if b_pad == B else jnp.pad(x, ((0, b_pad - B), (0, 0)))
    h = h.astype(compute_dtype)
    n_layers = len(weights)
    for i, (w, b) in enumerate(zip(weights, biases)):
        last = (i == n_layers - 1)
        h = _tiled_layer(h, w, b, tm=tm, relu=not last,
                         sigmoid=(sigmoid and last),
                         out_dtype=jnp.float32 if last else compute_dtype,
                         vmem_limit=vmem_limit)
    return h[:B]


# -------------------- dispatcher --------------------

def mlp_forward(x, weights, biases, *, sigmoid=False, force_tiled=False):
    """x: [B, Din_pad] f32. weights[i]: [pdims[i], pdims[i+1]] (compute dtype),
    biases[i]: [1, pdims[i+1]] f32. BN already folded into w/b."""
    B, din_pad = x.shape
    pdims = [din_pad] + [w.shape[1] for w in weights]
    compute_dtype = weights[0].dtype
    w_bytes = compute_dtype.itemsize
    sub = 16 if w_bytes == 2 else 8
    budget, vmem_limit = _vmem_caps()

    # Largest batch tile whose fused-resident footprint fits the budget.
    tb_max = 512
    while tb_max > sub and _vmem_need_bytes(pdims, tb_max, w_bytes) > budget:
        tb_max //= 2
    tb_max = max(tb_max, sub)
    fits = _vmem_need_bytes(pdims, tb_max, w_bytes) <= budget

    if force_tiled or not fits:
        # Weights alone do not fit fused-resident in VMEM -> K/N-tiled per-layer path.
        return _tiled_mlp(x, weights, biases, sigmoid=sigmoid, vmem_limit=vmem_limit)

    # Rebalanced batch tiling: last tile never mostly padding; >=2 steps for v7x 2-TC.
    n_tiles = max(_cdiv(B, tb_max), 1)
    if n_tiles == 1 and B >= 2 * sub:
        n_tiles = 2
    tb = _round_up(_cdiv(B, n_tiles), sub)
    b_pad = n_tiles * tb
    if b_pad != B:
        x = jnp.pad(x, ((0, b_pad - B), (0, 0)))

    io_buf = 2
    if n_tiles >= 8 and _vmem_need_bytes(pdims, tb, w_bytes, io_buf=3) <= budget:
        io_buf = 3    # deeper x/out pipeline only for long grids

    try:
        out = _call_fused(x, weights, biases, sigmoid=sigmoid, tb=tb, io_buf=io_buf,
                          use_pipeline_modes=True, vmem_limit=vmem_limit)
    except Exception:
        # JAX version without BlockSpec pipeline_mode support: default buffering.
        out = _call_fused(x, weights, biases, sigmoid=sigmoid, tb=tb, io_buf=2,
                          use_pipeline_modes=False, vmem_limit=vmem_limit)
    return out[:B]


# -------------------- parameter construction --------------------

def xavier_normal(key, fan_in, fan_out, gain=1.0):
    std = gain * math.sqrt(2.0 / (fan_in + fan_out))
    # Stored [fan_in, fan_out] (transpose of PyTorch's [out, in]); std matches
    # nn.init.xavier_normal_ (orientation independent).
    return std * jax.random.normal(key, (fan_in, fan_out), dtype=jnp.float32)


def init_fully_connected_layer(key, input_size, hidden_size, bias):
    """Raw (unfolded, unpadded) parameters mirroring the PyTorch module at init."""
    assert len(hidden_size) >= 1 and len(bias) == len(hidden_size)
    dims = [input_size] + list(hidden_size)
    keys = jax.random.split(key, len(hidden_size))
    layers = []
    for i in range(len(hidden_size)):
        layer = {
            "w": xavier_normal(keys[i], dims[i], dims[i + 1]),
            "b": jnp.zeros((dims[i + 1],), dtype=jnp.float32),
        }
        if i < len(hidden_size) - 1:   # BatchNorm1d running stats (eval mode)
            h = hidden_size[i]
            layer["gamma"] = jnp.ones((h,), dtype=jnp.float32)
            layer["beta"] = jnp.zeros((h,), dtype=jnp.float32)
            layer["mean"] = jnp.zeros((h,), dtype=jnp.float32)
            layer["var"] = jnp.ones((h,), dtype=jnp.float32)
        layers.append(layer)
    return layers


def _fold_bn(layer):
    """Fold eval-mode BatchNorm (running stats) into the preceding Linear."""
    w, b = layer["w"], layer["b"]
    if "gamma" in layer:
        scale = layer["gamma"] * jax.lax.rsqrt(layer["var"] + BN_EPS)
        w = w * scale[None, :]
        b = (b - layer["mean"]) * scale + layer["beta"]
    return w, b


def prepare_fused_params(raw_layers, input_size, hidden_size,
                         compute_dtype=jnp.bfloat16):
    """Fold BN, pad every feature dim to 128 lanes (zero rows/cols are exact no-ops
    through matmul+bias+ReLU) and cast weights to the MXU compute dtype. Must be
    re-run whenever BN running stats change."""
    dims = [input_size] + list(hidden_size)
    pdims = [_round_up(d, LANE) for d in dims]
    weights, biases = [], []
    for i, layer in enumerate(raw_layers):
        w, b = _fold_bn(layer)
        w_p = jnp.zeros((pdims[i], pdims[i + 1]), jnp.float32)
        w_p = w_p.at[: dims[i], : dims[i + 1]].set(w)
        b_p = jnp.zeros((1, pdims[i + 1]), jnp.float32)
        b_p = b_p.at[0, : dims[i + 1]].set(b)
        weights.append(w_p.astype(compute_dtype))
        biases.append(b_p)
    return weights, biases, dims[-1]


def fully_connected_forward(fused_params, x, sigmoid=False, force_tiled=False):
    weights, biases, out_features = fused_params
    din_pad = weights[0].shape[0]
    if x.shape[1] != din_pad:
        x = jnp.pad(x, ((0, 0), (0, din_pad - x.shape[1])))
    out = mlp_forward(x.astype(jnp.float32), weights, biases,
                      sigmoid=sigmoid, force_tiled=force_tiled)
    return out[:, :out_features]


# -------------------- demo --------------------

if __name__ == "__main__":
    key = jax.random.PRNGKey(0)
    kx, kp = jax.random.split(key)

    batch = 8
    input_size = 32
    hidden_size = [64, 32]
    bias = [True, True]
    use_sigmoid = False

    x = jax.random.normal(kx, (batch, input_size), dtype=jnp.float32)
    raw = init_fully_connected_layer(kp, input_size, hidden_size, bias)
    fused = prepare_fused_params(raw, input_size, hidden_size)   # bf16 weights

    out = fully_connected_forward(fused, x, sigmoid=use_sigmoid)
    out = jax.block_until_ready(out)
    assert out.shape == (batch, hidden_size[-1]), out.shape

    # bf16-consistent reference (same folded weights, bf16 products, f32 accumulation).
    folded = [_fold_bn(layer) for layer in raw]
    ref16 = x
    for i, (wf, bf) in enumerate(folded):
        ref16 = jnp.dot(ref16.astype(jnp.bfloat16), wf.astype(jnp.bfloat16),
                        preferred_element_type=jnp.float32) + bf[None, :]
        if i < len(folded) - 1:
            ref16 = jnp.maximum(ref16, 0.0)
    if use_sigmoid:
        ref16 = jax.nn.sigmoid(ref16)
    assert jnp.allclose(out, ref16, atol=1e-2, rtol=1e-2), \
        float(jnp.max(jnp.abs(out - ref16)))

    # Full-f32 eval-mode module reference: loose check of the bf16 path.
    ref32 = x
    for i, layer in enumerate(raw):
        ref32 = ref32 @ layer["w"] + layer["b"][None, :]
        if i < len(raw) - 1:
            ref32 = (ref32 - layer["mean"]) * jax.lax.rsqrt(layer["var"] + BN_EPS) \
                    * layer["gamma"] + layer["beta"]
            ref32 = jnp.maximum(ref32, 0.0)
    if use_sigmoid:
        ref32 = jax.nn.sigmoid(ref32)
    assert jnp.allclose(out, ref32, atol=1e-1, rtol=1e-1), \
        float(jnp.max(jnp.abs(out - ref32)))

    # Exercise the K/N-tiled fallback path (used when weights don't fit VMEM-resident).
    out_tiled = fully_connected_forward(fused, x, sigmoid=use_sigmoid, force_tiled=True)
    out_tiled = jax.block_until_ready(out_tiled)
    assert jnp.allclose(out_tiled, ref16, atol=1e-2, rtol=1e-2), \
        float(jnp.max(jnp.abs(out_tiled - ref16)))

    print("KERNEL_OK")
</pallas_src>

<mosaic_0001>
module attributes {stable_mosaic.version = 11 : i64} {
  func.func @kernel(%arg0: i32, %arg1: memref<16x128xf32, #tpu.memory_space<vmem>>, %arg2: memref<128x128xbf16, #tpu.memory_space<vmem>>, %arg3: memref<1x128xf32, #tpu.memory_space<vmem>>, %arg4: memref<128x128xbf16, #tpu.memory_space<vmem>>, %arg5: memref<1x128xf32, #tpu.memory_space<vmem>>, %arg6: memref<16x128xf32, #tpu.memory_space<vmem>>) attributes {dimension_semantics = [#tpu.dimension_semantics<parallel>], iteration_bounds = array<i64: 1>, scalar_prefetch = 0 : i64, scratch_operands = 0 : i64, tpu.core_type = #tpu.core_type<tc>, window_params = [{pipeline_mode = #tpu.pipeline_mode<double_buffered>, transform_indices = @transform_0, window_bounds = array<i64: 16, 128>}, {pipeline_mode = #tpu.pipeline_mode<synchronous>, transform_indices = @transform_1, window_bounds = array<i64: 128, 128>}, {pipeline_mode = #tpu.pipeline_mode<synchronous>, transform_indices = @transform_2, window_bounds = array<i64: 1, 128>}, {pipeline_mode = #tpu.pipeline_mode<synchronous>, transform_indices = @transform_3, window_bounds = array<i64: 128, 128>}, {pipeline_mode = #tpu.pipeline_mode<synchronous>, transform_indices = @transform_4, window_bounds = array<i64: 1, 128>}, {pipeline_mode = #tpu.pipeline_mode<double_buffered>, transform_indices = @transform_5, window_bounds = array<i64: 16, 128>}]} {
    %c0 = arith.constant 0 : index
    %c0_0 = arith.constant 0 : index
    %0 = vector.load %arg1[%c0, %c0_0] : memref<16x128xf32, #tpu.memory_space<vmem>>, vector<16x128xf32>
    %c0_1 = arith.constant 0 : index
    %c0_2 = arith.constant 0 : index
    %1 = vector.load %arg2[%c0_1, %c0_2] : memref<128x128xbf16, #tpu.memory_space<vmem>>, vector<128x128xbf16>
    %c0_3 = arith.constant 0 : index
    %c0_4 = arith.constant 0 : index
    %2 = vector.load %arg3[%c0_3, %c0_4] : memref<1x128xf32, #tpu.memory_space<vmem>>, vector<1x128xf32>
    %3 = arith.truncf %0 : vector<16x128xf32> to vector<16x128xbf16>
    %cst = arith.constant dense<0.000000e+00> : vector<16x128xf32>
    %4 = tpu.matmul %3, %1, %cst {dimension_numbers = #tpu.dot_dimension_numbers<[1], [0], [0], [1], [0, 0, 1, 1], [], []>} : vector<16x128xbf16>, vector<128x128xbf16>, vector<16x128xf32> -> vector<16x128xf32>
    %5 = vector.broadcast %2 : vector<1x128xf32> to vector<16x128xf32>
    %6 = arith.addf %4, %5 : vector<16x128xf32>
    %cst_5 = arith.constant 0.000000e+00 : f32
    %7 = vector.broadcast %cst_5 : f32 to vector<16x128xf32>
    %8 = arith.maximumf %6, %7 : vector<16x128xf32>
    %c0_6 = arith.constant 0 : index
    %c0_7 = arith.constant 0 : index
    %9 = vector.load %arg4[%c0_6, %c0_7] : memref<128x128xbf16, #tpu.memory_space<vmem>>, vector<128x128xbf16>
    %c0_8 = arith.constant 0 : index
    %c0_9 = arith.constant 0 : index
    %10 = vector.load %arg5[%c0_8, %c0_9] : memref<1x128xf32, #tpu.memory_space<vmem>>, vector<1x128xf32>
    %11 = arith.truncf %8 : vector<16x128xf32> to vector<16x128xbf16>
    %cst_10 = arith.constant dense<0.000000e+00> : vector<16x128xf32>
    %12 = tpu.matmul %11, %9, %cst_10 {dimension_numbers = #tpu.dot_dimension_numbers<[1], [0], [0], [1], [0, 0, 1, 1], [], []>} : vector<16x128xbf16>, vector<128x128xbf16>, vector<16x128xf32> -> vector<16x128xf32>
    %13 = vector.broadcast %10 : vector<1x128xf32> to vector<16x128xf32>
    %14 = arith.addf %12, %13 : vector<16x128xf32>
    %c0_11 = arith.constant 0 : index
    %c0_12 = arith.constant 0 : index
    %15 = vector.load %arg6[%c0_11, %c0_12] : memref<16x128xf32, #tpu.memory_space<vmem>>, vector<16x128xf32>
    tpu.vector_store %arg6[%c0_11, %c0_12], %14 {strides = array<i32>} : memref<16x128xf32, #tpu.memory_space<vmem>>, vector<16x128xf32>,
    return
  }
  func.func @transform_0(%arg0: i32) -> (i32, i32) {
    %c0_i32 = arith.constant 0 : i32
    %c0_i32_0 = arith.constant 0 : i32
    return %arg0, %c0_i32 : i32, i32
  }
  func.func @transform_1(%arg0: i32) -> (i32, i32) {
    %c0_i32 = arith.constant 0 : i32
    %c0_i32_0 = arith.constant 0 : i32
    %c0_i32_1 = arith.constant 0 : i32
    return %c0_i32, %c0_i32_0 : i32, i32
  }
  func.func @transform_2(%arg0: i32) -> (i32, i32) {
    %c0_i32 = arith.constant 0 : i32
    %c0_i32_0 = arith.constant 0 : i32
    %c0_i32_1 = arith.constant 0 : i32
    return %c0_i32, %c0_i32_0 : i32, i32
  }
  func.func @transform_3(%arg0: i32) -> (i32, i32) {
    %c0_i32 = arith.constant 0 : i32
    %c0_i32_0 = arith.constant 0 : i32
    %c0_i32_1 = arith.constant 0 : i32
    return %c0_i32, %c0_i32_0 : i32, i32
  }
  func.func @transform_4(%arg0: i32) -> (i32, i32) {
    %c0_i32 = arith.constant 0 : i32
    %c0_i32_0 = arith.constant 0 : i32
    %c0_i32_1 = arith.constant 0 : i32
    return %c0_i32, %c0_i32_0 : i32, i32
  }
  func.func @transform_5(%arg0: i32) -> (i32, i32) {
    %c0_i32 = arith.constant 0 : i32
    %c0_i32_0 = arith.constant 0 : i32
    return %arg0, %c0_i32 : i32, i32
  }
}

module attributes {stable_mosaic.version = 11 : i64} {
  func.func @kernel(%arg0: i32, %arg1: memref<16x128xf32, #tpu.memory_space<vmem>>, %arg2: memref<128x128xbf16, #tpu.memory_space<vmem>>, %arg3: memref<1x128xf32, #tpu.memory_space<vmem>>, %arg4: memref<128x128xbf16, #tpu.memory_space<vmem>>, %arg5: memref<1x128xf32, #tpu.memory_space<vmem>>, %arg6: memref<16x128xf32, #tpu.memory_space<vmem>>) attributes {dimension_semantics = [#tpu.dimension_semantics<parallel>], iteration_bounds = array<i64: 1>, scalar_prefetch = 0 : i64, scratch_operands = 0 : i64, tpu.core_type = #tpu.core_type<tc>, window_params = [{transform_indices = @transform_0, window_bounds = array<i64: 16, 128>}, {pipeline_mode = #tpu.pipeline_mode<synchronous>, transform_indices = @transform_1, window_bounds = array<i64: 128, 128>}, {pipeline_mode = #tpu.pipeline_mode<synchronous>, transform_indices = @transform_2, window_bounds = array<i64: 1, 128>}, {pipeline_mode = #tpu.pipeline_mode<synchronous>, transform_indices = @transform_3, window_bounds = array<i64: 128, 128>}, {pipeline_mode = #tpu.pipeline_mode<synchronous>, transform_indices = @transform_4, window_bounds = array<i64: 1, 128>}, {transform_indices = @transform_5, window_bounds = array<i64: 16, 128>}]} {
    %c0 = arith.constant 0 : index
    %c0_0 = arith.constant 0 : index
    %0 = vector.load %arg1[%c0, %c0_0] : memref<16x128xf32, #tpu.memory_space<vmem>>, vector<16x128xf32>
    %c0_1 = arith.constant 0 : index
    %c0_2 = arith.constant 0 : index
    %1 = vector.load %arg2[%c0_1, %c0_2] : memref<128x128xbf16, #tpu.memory_space<vmem>>, vector<128x128xbf16>
    %c0_3 = arith.constant 0 : index
    %c0_4 = arith.constant 0 : index
    %2 = vector.load %arg3[%c0_3, %c0_4] : memref<1x128xf32, #tpu.memory_space<vmem>>, vector<1x128xf32>
    %3 = arith.truncf %0 : vector<16x128xf32> to vector<16x128xbf16>
    %cst = arith.constant dense<0.000000e+00> : vector<16x128xf32>
    %4 = tpu.matmul %3, %1, %cst {dimension_numbers = #tpu.dot_dimension_numbers<[1], [0], [0], [1], [0, 0, 1, 1], [], []>} : vector<16x128xbf16>, vector<128x128xbf16>, vector<16x128xf32> -> vector<16x128xf32>
    %5 = vector.broadcast %2 : vector<1x128xf32> to vector<16x128xf32>
    %6 = arith.addf %4, %5 : vector<16x128xf32>
    %cst_5 = arith.constant 0.000000e+00 : f32
    %7 = vector.broadcast %cst_5 : f32 to vector<16x128xf32>
    %8 = arith.maximumf %6, %7 : vector<16x128xf32>
    %c0_6 = arith.constant 0 : index
    %c0_7 = arith.constant 0 : index
    %9 = vector.load %arg4[%c0_6, %c0_7] : memref<128x128xbf16, #tpu.memory_space<vmem>>, vector<128x128xbf16>
    %c0_8 = arith.constant 0 : index
    %c0_9 = arith.constant 0 : index
    %10 = vector.load %arg5[%c0_8, %c0_9] : memref<1x128xf32, #tpu.memory_space<vmem>>, vector<1x128xf32>
    %11 = arith.truncf %8 : vector<16x128xf32> to vector<16x128xbf16>
    %cst_10 = arith.constant dense<0.000000e+00> : vector<16x128xf32>
    %12 = tpu.matmul %11, %9, %cst_10 {dimension_numbers = #tpu.dot_dimension_numbers<[1], [0], [0], [1], [0, 0, 1, 1], [], []>} : vector<16x128xbf16>, vector<128x128xbf16>, vector<16x128xf32> -> vector<16x128xf32>
    %13 = vector.broadcast %10 : vector<1x128xf32> to vector<16x128xf32>
    %14 = arith.addf %12, %13 : vector<16x128xf32>
    %c0_11 = arith.constant 0 : index
    %c0_12 = arith.constant 0 : index
    %15 = vector.load %arg6[%c0_11, %c0_12] : memref<16x128xf32, #tpu.memory_space<vmem>>, vector<16x128xf32>
    tpu.vector_store %arg6[%c0_11, %c0_12], %14 {strides = array<i32>} : memref<16x128xf32, #tpu.memory_space<vmem>>, vector<16x128xf32>,
    return
  }
  func.func @transform_0(%arg0: i32) -> (i32, i32) {
    %c0_i32 = arith.constant 0 : i32
    %c0_i32_0 = arith.constant 0 : i32
    return %arg0, %c0_i32 : i32, i32
  }
  func.func @transform_1(%arg0: i32) -> (i32, i32) {
    %c0_i32 = arith.constant 0 : i32
    %c0_i32_0 = arith.constant 0 : i32
    %c0_i32_1 = arith.constant 0 : i32
    return %c0_i32, %c0_i32_0 : i32, i32
  }
  func.func @transform_2(%arg0: i32) -> (i32, i32) {
    %c0_i32 = arith.constant 0 : i32
    %c0_i32_0 = arith.constant 0 : i32
    %c0_i32_1 = arith.constant 0 : i32
    return %c0_i32, %c0_i32_0 : i32, i32
  }
  func.func @transform_3(%arg0: i32) -> (i32, i32) {
    %c0_i32 = arith.constant 0 : i32
    %c0_i32_0 = arith.constant 0 : i32
    %c0_i32_1 = arith.constant 0 : i32
    return %c0_i32, %c0_i32_0 : i32, i32
  }
  func.func @transform_4(%arg0: i32) -> (i32, i32) {
    %c0_i32 = arith.constant 0 : i32
    %c0_i32_0 = arith.constant 0 : i32
    %c0_i32_1 = arith.constant 0 : i32
    return %c0_i32, %c0_i32_0 : i32, i32
  }
  func.func @transform_5(%arg0: i32) -> (i32, i32) {
    %c0_i32 = arith.constant 0 : i32
    %c0_i32_0 = arith.constant 0 : i32
    return %arg0, %c0_i32 : i32, i32
  }
}

</mosaic_0001>

<bundles_post_ra>
// kernel: tpu_custom_call.1
= control target key start
LH: loop header
LB: loop body
LE: loop exit
PB: predicated region body
PF: predicated region fallthrough
CT: control target
= control target key end

     0   :  { %10 = vsyncpa [#allocation3], 0  ;;  %s565_s0 = inlined_call_operand.hbm [shape: f32[16,128], index: 0, kind: input, shape index: {}]   ;;  %s566_s1 = inlined_call_operand.hbm [shape: bf16[128,128], index: 1, kind: input, shape index: {}]   ;;  %s567_s2 = inlined_call_operand.vmem [shape: f32[1,128], index: 2, kind: input, shape index: {}]   ;;  %s568_s3 = inlined_call_operand.hbm [shape: bf16[128,128], index: 3, kind: input, shape index: {}]   ;;  %s569_s4 = inlined_call_operand.vmem [shape: f32[1,128], index: 4, kind: input, shape index: {}]   ;;  %s570_s5 = inlined_call_operand.hbm [shape: f32[16,128], index: 5, kind: output, shape index: {}]  }
   0x1   :  { %11 = vsyncpa [#allocation6], 0 }
   0x2   :  { %12 = vsyncpa [#allocation4], 0  ;;  %s501_s18 = smov [#allocation5]  }
   0x3   :  { %s30_s19 = sshll.u32 %s501_s18, 4  ;;  %s31_s19 = int_to_ptr.vmem [resolvable:$true] %s30_s19 }
   0x4   :  { %s423_s20 = scalar_lea.vmem %s31_s19, 1024  ;;  %p428_p1 = scmp.lt.s32.totalorder %s31_s19, %s31_s19 }
   0x5   :  { %p424_p0 = scmp.ne.s32.totalorder %s31_s19, %s423_s20  ;;  %p429_p2 = scmp.lt.s32.totalorder %s423_s20, %s423_s20 }
   0x7   :  { %p430_p3 = por %p429_p2, %p428_p1 }
   0x9   :  { %p431_p4 = pnand %p430_p3, %p424_p0 }
   0xb   :  { %434 = shalt.err (!%p431_p4)
}
   0xc   :  { %s502_s21 = smov 64   ;;  %s503_s22 = smov 4  }
   0xd   :  { %36 = dma.hbm_to_vmem [thread:$0]  %s566_s1, 1024, %s31_s19, [#allocation6], %s502_s21, %s502_s21, %s503_s22  }
   0xe   :  { %s504_s25 = smov [#allocation2]  }
   0xf   :  { %s18_s26 = sshll.u32 %s504_s25, 4  ;;  %s19_s26 = int_to_ptr.vmem [resolvable:$true] %s18_s26 }
  0x10   :  { %s443_s27 = scalar_lea.vmem %s19_s26, 256  ;;  %p448_p6 = scmp.lt.s32.totalorder %s19_s26, %s19_s26 }
  0x11   :  { %p444_p5 = scmp.ne.s32.totalorder %s19_s26, %s443_s27  ;;  %p449_p7 = scmp.lt.s32.totalorder %s443_s27, %s443_s27 }
  0x13   :  { %p450_p8 = por %p449_p7, %p448_p6 }
  0x15   :  { %p451_p9 = pnand %p450_p8, %p444_p5 }
  0x17   :  { %454 = shalt.err (!%p451_p9)
}
  0x18   :  { %s505_s28 = smov 128   ;;  %s506_s29 = smov 8  }
  0x19   :  { %24 = dma.hbm_to_vmem [thread:$0]  %s565_s0, 256, %s19_s26, [#allocation3], %s505_s28, %s505_s28, %s506_s29  }
  0x1a   :  { %s507_s1 = smov [#allocation7]  }
  0x1b   :  { %s44_s7 = sshll.u32 %s507_s1, 4  ;;  %s45_s7 = int_to_ptr.vmem [resolvable:$true] %s44_s7 }
  0x1c   :  { %s463_s8 = scalar_lea.vmem %s45_s7, 1024  ;;  %p468_p11 = scmp.lt.s32.totalorder %s45_s7, %s45_s7 }
  0x1d   :  { %p464_p10 = scmp.ne.s32.totalorder %s45_s7, %s463_s8  ;;  %p469_p12 = scmp.lt.s32.totalorder %s463_s8, %s463_s8 }
  0x1f   :  { %p470_p13 = por %p469_p12, %p468_p11 }
  0x21   :  { %p471_p0 = pnand %p470_p13, %p464_p10 }
  0x23   :  { %474 = shalt.err (!%p471_p0)
}
  0x24   :  { %50 = dma.hbm_to_vmem [thread:$0]  %s568_s3, 1024, %s45_s7, [#allocation6], %s502_s21, %s502_s21, %s503_s22  }
  0x25   :  { %495 = dma.done.wait [#allocation3], 256  }
  0x26   :  { %496 = vsyncadd [#allocation3], 4294967040 }
  0x27   :  { %497 = dma.done.wait [#allocation6], 2048  }
  0x28   :  { %498 = vsyncadd [#allocation6], 4294965248  ;;  %v508_v0 = vmov 0.0   ;;  %vm509_vm0 = vmmov 0   ;;  %v399_v1 = vld [vmem:[#allocation5 + $0x38] sm:$0xff]   ;;  %v400_v2 = vld [vmem:[#allocation5 + $0x30] sm:$0xff]  }
  0x29   :  { %349 = vmatprep.subr.bf16.mxu0 %v508_v0  ;;  %365 = vmatprep.mubr.msk.bf16.mxu0 %vm509_vm0, %v508_v0  ;;  %v401_v3 = vld [vmem:[#allocation5 + $0x28] sm:$0xff]   ;;  %v407_v4 = vld [vmem:[#allocation7 + $0x38] sm:$0xff]   ;;  %v402_v5 = vld [vmem:[#allocation5 + $0x20] sm:$0xff]   ;;  %s510_s13 = smov [#allocation8]  }
  0x2a   :  { %369 = vmatprep.subr.bf16.mxu1 %v508_v0  ;;  %385 = vmatprep.mubr.msk.bf16.mxu1 %vm509_vm0, %v508_v0  ;;  %v408_v6 = vld [vmem:[#allocation7 + $0x30] sm:$0xff]   ;;  %v403_v7 = vld [vmem:[#allocation5 + $0x18] sm:$0xff]   ;;  %v409_v8 = vld [vmem:[#allocation7 + $0x28] sm:$0xff]   ;;  %s300_s14 = sshll.u32 %s510_s13, 4  ;;  %s301_s14 = int_to_ptr.vmem [resolvable:$true] %s300_s14 }
  0x2b   :  { %350 = vmatpush3.bf16.msra.mxu0 %v399_v1  ;;  %370 = vmatpush3.bf16.msra.mxu1 %v407_v4  ;;  %v404_v9 = vld [vmem:[#allocation5 + $0x10] sm:$0xff]   ;;  %v410_v10 = vld [vmem:[#allocation7 + $0x20] sm:$0xff]   ;;  %v405_v11 = vld [vmem:[#allocation5 + $0x8] sm:$0xff]   ;;  %p480_p2 = scmp.lt.s32.totalorder %s301_s14, %s301_s14 }
  0x2c   :  { %351 = vmatprep.subr.bf16.mxu0 %v508_v0  ;;  %371 = vmatprep.subr.bf16.mxu1 %v508_v0  ;;  %v411_v12 = vld [vmem:[#allocation7 + $0x18] sm:$0xff]   ;;  %v406_v13 = vld [vmem:[#allocation5] sm:$0xff]   ;;  %v63_v14 = vld [vmem:[#allocation2] sm:$0xff] }
  0x2d   :  { %v64_v15 = vld [vmem:[#allocation2 + $0x8] sm:$0xff]  ;;  %v412_v17 = vld [vmem:[#allocation7 + $0x10] sm:$0xff]   ;;  %v413_v18 = vld [vmem:[#allocation7 + $0x8] sm:$0xff]  }
  0x2e   :  { %v82_v16 = vpack.c.bf16 %v64_v15, %v63_v14  ;;  %v414_v19 = vld [vmem:[#allocation7] sm:$0xff]   ;;  %v313_v20 = vld [vmem:[%s567_s2] ss:$0 sm:$0xff]  ;;  %s475_s2 = scalar_lea.vmem %s301_s14, 256 }
  0x2f   :  { %352 = vmatpush3.bf16.msra.mxu0 %v400_v2  ;;  %372 = vmatpush3.bf16.msra.mxu1 %v408_v6  ;;  %v322_v30 = vld [vmem:[%s569_s4] ss:$0 sm:$0xff]  ;;  %p476_p1 = scmp.ne.s32.totalorder %s301_s14, %s475_s2  ;;  %p481_p3 = scmp.lt.s32.totalorder %s475_s2, %s475_s2 }
  0x30   :  { %353 = vmatprep.subr.bf16.mxu0 %v508_v0  ;;  %373 = vmatprep.subr.bf16.mxu1 %v508_v0 }
  0x31   :  { %p482_p4 = por %p481_p3, %p480_p2 }
  0x33   :  { %354 = vmatpush3.bf16.msra.mxu0 %v401_v3  ;;  %374 = vmatpush3.bf16.msra.mxu1 %v409_v8  ;;  %p483_p5 = pnand %p482_p4, %p476_p1 }
  0x34   :  { %355 = vmatprep.subr.bf16.mxu0 %v508_v0  ;;  %375 = vmatprep.subr.bf16.mxu1 %v508_v0 }
  0x37   :  { %356 = vmatpush3.bf16.msra.mxu0 %v402_v5  ;;  %376 = vmatpush3.bf16.msra.mxu1 %v410_v10 }
  0x38   :  { %357 = vmatprep.subr.bf16.mxu0 %v508_v0  ;;  %377 = vmatprep.subr.bf16.mxu1 %v508_v0 }
  0x3b   :  { %358 = vmatpush3.bf16.msra.mxu0 %v403_v7  ;;  %378 = vmatpush3.bf16.msra.mxu1 %v411_v12 }
  0x3c   :  { %359 = vmatprep.subr.bf16.mxu0 %v508_v0  ;;  %379 = vmatprep.subr.bf16.mxu1 %v508_v0 }
  0x3f   :  { %360 = vmatpush3.bf16.msra.mxu0 %v404_v9  ;;  %380 = vmatpush3.bf16.msra.mxu1 %v412_v17 }
  0x40   :  { %361 = vmatprep.subr.bf16.mxu0 %v508_v0  ;;  %381 = vmatprep.subr.bf16.mxu1 %v508_v0 }
  0x43   :  { %362 = vmatpush3.bf16.msra.mxu0 %v405_v11  ;;  %382 = vmatpush3.bf16.msra.mxu1 %v413_v18 }
  0x44   :  { %363 = vmatprep.subr.bf16.mxu0 %v508_v0  ;;  %383 = vmatprep.subr.bf16.mxu1 %v508_v0 }
  0x47   :  { %364 = vmatpush3.bf16.msra.mxu0 %v406_v13  ;;  %384 = vmatpush3.bf16.msra.mxu1 %v414_v19 }
  0x4a   :  { %366 = vmatmul.mubr.bf16.vlgmr.msra.gmra.mxu0 %v82_v16 }
 0x10a   :  { %v171_v21 = vpop.f32.mrf.mxu0 }
 0x10b   :  { %v172_v23 = vadd.f32 %v313_v20, %v171_v21 }
 0x10c   :  { %v367_v22 = vpop.f32.mrf.mxu0 }
 0x10d   :  { %v178_v27 = vmax.f32 %v172_v23, 0.0 }
 0x10e   :  { %v174_v24 = vpop.f32.mrf.mxu0 }
 0x10f   :  { %v175_v25 = vadd.f32 %v313_v20, %v174_v24 }
 0x110   :  { %v368_v26 = vpop.f32.mrf.mxu0 }
 0x111   :  { %v179_v28 = vmax.f32 %v175_v25, 0.0 }
 0x113   :  { %v197_v29 = vpack.c.bf16 %v179_v28, %v178_v27 }
 0x115   :  { %386 = vmatmul.mubr.bf16.vlgmr.msra.gmra.mxu1 %v197_v29 }
 0x1d5   :  { %v286_v31 = vpop.f32.mrf.mxu1 }
 0x1d6   :  { %v287_v32 = vadd.f32 %v322_v30, %v286_v31 }
 0x1d7   :  { %v387_v33 = vpop.f32.mrf.mxu1 }
 0x1d8   :  { %293 = vst [vmem:[#allocation8] sm:$0xff] %v287_v32 }
 0x1d9   :  { %v289_v34 = vpop.f32.mrf.mxu1 }
 0x1da   :  { %v290_v35 = vadd.f32 %v322_v30, %v289_v34 }
 0x1db   :  { %v388_v36 = vpop.f32.mrf.mxu1 }
 0x1dc   :  { %294 = vst [vmem:[#allocation8 + $0x8] sm:$0xff] %v290_v35 }
 0x1dd   :  { %486 = shalt.err (!%p483_p5)
}
 0x1de   :  { %306 = dma.vmem_to_hbm [thread:$0]  %s301_s14, 256, %s570_s5, [#allocation4], %s505_s28, %s505_s28, %s506_s29  }
 0x1df   :  { %499 = dma.done.wait [#allocation4], 256  }
 0x1e0   :  { %500 = vsyncadd [#allocation4], 4294967040 }
 0x1e1   :  { %310 = vsyncpa [#allocation3], 1 }
 0x1e2   :  { %311 = vsyncpa [#allocation6], 1 }
 0x1e3   :  { %312 = vsyncpa [#allocation4], 1 }

// kernel: tpu_custom_call.1
= control target key start
LH: loop header
LB: loop body
LE: loop exit
PB: predicated region body
PF: predicated region fallthrough
CT: control target
= control target key end

     0   :  { %10 = vsyncpa [#allocation3], 0  ;;  %s565_s0 = inlined_call_operand.hbm [shape: f32[16,128], index: 0, kind: input, shape index: {}]   ;;  %s566_s1 = inlined_call_operand.hbm [shape: bf16[128,128], index: 1, kind: input, shape index: {}]   ;;  %s567_s2 = inlined_call_operand.vmem [shape: f32[1,128], index: 2, kind: input, shape index: {}]   ;;  %s568_s3 = inlined_call_operand.hbm [shape: bf16[128,128], index: 3, kind: input, shape index: {}]   ;;  %s569_s4 = inlined_call_operand.vmem [shape: f32[1,128], index: 4, kind: input, shape index: {}]   ;;  %s570_s5 = inlined_call_operand.hbm [shape: f32[16,128], index: 5, kind: output, shape index: {}]  }
   0x1   :  { %11 = vsyncpa [#allocation6], 0 }
   0x2   :  { %12 = vsyncpa [#allocation4], 0  ;;  %s501_s18 = smov [#allocation5]  }
   0x3   :  { %s30_s19 = sshll.u32 %s501_s18, 4  ;;  %s31_s19 = int_to_ptr.vmem [resolvable:$true] %s30_s19 }
   0x4   :  { %s423_s20 = scalar_lea.vmem %s31_s19, 1024  ;;  %p428_p1 = scmp.lt.s32.totalorder %s31_s19, %s31_s19 }
   0x5   :  { %p424_p0 = scmp.ne.s32.totalorder %s31_s19, %s423_s20  ;;  %p429_p2 = scmp.lt.s32.totalorder %s423_s20, %s423_s20 }
   0x7   :  { %p430_p3 = por %p429_p2, %p428_p1 }
   0x9   :  { %p431_p4 = pnand %p430_p3, %p424_p0 }
   0xb   :  { %434 = shalt.err (!%p431_p4)
}
   0xc   :  { %s502_s21 = smov 64   ;;  %s503_s22 = smov 4  }
   0xd   :  { %36 = dma.hbm_to_vmem [thread:$0]  %s566_s1, 1024, %s31_s19, [#allocation6], %s502_s21, %s502_s21, %s503_s22  }
   0xe   :  { %s504_s25 = smov [#allocation2]  }
   0xf   :  { %s18_s26 = sshll.u32 %s504_s25, 4  ;;  %s19_s26 = int_to_ptr.vmem [resolvable:$true] %s18_s26 }
  0x10   :  { %s443_s27 = scalar_lea.vmem %s19_s26, 256  ;;  %p448_p6 = scmp.lt.s32.totalorder %s19_s26, %s19_s26 }
  0x11   :  { %p444_p5 = scmp.ne.s32.totalorder %s19_s26, %s443_s27  ;;  %p449_p7 = scmp.lt.s32.totalorder %s443_s27, %s443_s27 }
  0x13   :  { %p450_p8 = por %p449_p7, %p448_p6 }
  0x15   :  { %p451_p9 = pnand %p450_p8, %p444_p5 }
  0x17   :  { %454 = shalt.err (!%p451_p9)
}
  0x18   :  { %s505_s28 = smov 128   ;;  %s506_s29 = smov 8  }
  0x19   :  { %24 = dma.hbm_to_vmem [thread:$0]  %s565_s0, 256, %s19_s26, [#allocation3], %s505_s28, %s505_s28, %s506_s29  }
  0x1a   :  { %s507_s1 = smov [#allocation7]  }
  0x1b   :  { %s44_s7 = sshll.u32 %s507_s1, 4  ;;  %s45_s7 = int_to_ptr.vmem [resolvable:$true] %s44_s7 }
  0x1c   :  { %s463_s8 = scalar_lea.vmem %s45_s7, 1024  ;;  %p468_p11 = scmp.lt.s32.totalorder %s45_s7, %s45_s7 }
  0x1d   :  { %p464_p10 = scmp.ne.s32.totalorder %s45_s7, %s463_s8  ;;  %p469_p12 = scmp.lt.s32.totalorder %s463_s8, %s463_s8 }
  0x1f   :  { %p470_p13 = por %p469_p12, %p468_p11 }
  0x21   :  { %p471_p0 = pnand %p470_p13, %p464_p10 }
  0x23   :  { %474 = shalt.err (!%p471_p0)
}
  0x24   :  { %50 = dma.hbm_to_vmem [thread:$0]  %s568_s3, 1024, %s45_s7, [#allocation6], %s502_s21, %s502_s21, %s503_s22  }
  0x25   :  { %495 = dma.done.wait [#allocation3], 256  }
  0x26   :  { %496 = vsyncadd [#allocation3], 4294967040 }
  0x27   :  { %497 = dma.done.wait [#allocation6], 2048  }
  0x28   :  { %498 = vsyncadd [#allocation6], 4294965248  ;;  %v508_v0 = vmov 0.0   ;;  %vm509_vm0 = vmmov 0   ;;  %v399_v1 = vld [vmem:[#allocation5 + $0x38] sm:$0xff]   ;;  %v400_v2 = vld [vmem:[#allocation5 + $0x30] sm:$0xff]  }
  0x29   :  { %349 = vmatprep.subr.bf16.mxu0 %v508_v0  ;;  %365 = vmatprep.mubr.msk.bf16.mxu0 %vm509_vm0, %v508_v0  ;;  %v401_v3 = vld [vmem:[#allocation5 + $0x28] sm:$0xff]   ;;  %v407_v4 = vld [vmem:[#allocation7 + $0x38] sm:$0xff]   ;;  %v402_v5 = vld [vmem:[#allocation5 + $0x20] sm:$0xff]   ;;  %s510_s13 = smov [#allocation8]  }
  0x2a   :  { %369 = vmatprep.subr.bf16.mxu1 %v508_v0  ;;  %385 = vmatprep.mubr.msk.bf16.mxu1 %vm509_vm0, %v508_v0  ;;  %v408_v6 = vld [vmem:[#allocation7 + $0x30] sm:$0xff]   ;;  %v403_v7 = vld [vmem:[#allocation5 + $0x18] sm:$0xff]   ;;  %v409_v8 = vld [vmem:[#allocation7 + $0x28] sm:$0xff]   ;;  %s300_s14 = sshll.u32 %s510_s13, 4  ;;  %s301_s14 = int_to_ptr.vmem [resolvable:$true] %s300_s14 }
  0x2b   :  { %350 = vmatpush3.bf16.msra.mxu0 %v399_v1  ;;  %370 = vmatpush3.bf16.msra.mxu1 %v407_v4  ;;  %v404_v9 = vld [vmem:[#allocation5 + $0x10] sm:$0xff]   ;;  %v410_v10 = vld [vmem:[#allocation7 + $0x20] sm:$0xff]   ;;  %v405_v11 = vld [vmem:[#allocation5 + $0x8] sm:$0xff]   ;;  %p480_p2 = scmp.lt.s32.totalorder %s301_s14, %s301_s14 }
  0x2c   :  { %351 = vmatprep.subr.bf16.mxu0 %v508_v0  ;;  %371 = vmatprep.subr.bf16.mxu1 %v508_v0  ;;  %v411_v12 = vld [vmem:[#allocation7 + $0x18] sm:$0xff]   ;;  %v406_v13 = vld [vmem:[#allocation5] sm:$0xff]   ;;  %v63_v14 = vld [vmem:[#allocation2] sm:$0xff] }
  0x2d   :  { %v64_v15 = vld [vmem:[#allocation2 + $0x8] sm:$0xff]  ;;  %v412_v17 = vld [vmem:[#allocation7 + $0x10] sm:$0xff]   ;;  %v413_v18 = vld [vmem:[#allocation7 + $0x8] sm:$0xff]  }
  0x2e   :  { %v82_v16 = vpack.c.bf16 %v64_v15, %v63_v14  ;;  %v414_v19 = vld [vmem:[#allocation7] sm:$0xff]   ;;  %v313_v20 = vld [vmem:[%s567_s2] ss:$0 sm:$0xff]  ;;  %s475_s2 = scalar_lea.vmem %s301_s14, 256 }
  0x2f   :  { %352 = vmatpush3.bf16.msra.mxu0 %v400_v2  ;;  %372 = vmatpush3.bf16.msra.mxu1 %v408_v6  ;;  %v322_v30 = vld [vmem:[%s569_s4] ss:$0 sm:$0xff]  ;;  %p476_p1 = scmp.ne.s32.totalorder %s301_s14, %s475_s2  ;;  %p481_p3 = scmp.lt.s32.totalorder %s475_s2, %s475_s2 }
  0x30   :  { %353 = vmatprep.subr.bf16.mxu0 %v508_v0  ;;  %373 = vmatprep.subr.bf16.mxu1 %v508_v0 }
  0x31   :  { %p482_p4 = por %p481_p3, %p480_p2 }
  0x33   :  { %354 = vmatpush3.bf16.msra.mxu0 %v401_v3  ;;  %374 = vmatpush3.bf16.msra.mxu1 %v409_v8  ;;  %p483_p5 = pnand %p482_p4, %p476_p1 }
  0x34   :  { %355 = vmatprep.subr.bf16.mxu0 %v508_v0  ;;  %375 = vmatprep.subr.bf16.mxu1 %v508_v0 }
  0x37   :  { %356 = vmatpush3.bf16.msra.mxu0 %v402_v5  ;;  %376 = vmatpush3.bf16.msra.mxu1 %v410_v10 }
  0x38   :  { %357 = vmatprep.subr.bf16.mxu0 %v508_v0  ;;  %377 = vmatprep.subr.bf16.mxu1 %v508_v0 }
  0x3b   :  { %358 = vmatpush3.bf16.msra.mxu0 %v403_v7  ;;  %378 = vmatpush3.bf16.msra.mxu1 %v411_v12 }
  0x3c   :  { %359 = vmatprep.subr.bf16.mxu0 %v508_v0  ;;  %379 = vmatprep.subr.bf16.mxu1 %v508_v0 }
  0x3f   :  { %360 = vmatpush3.bf16.msra.mxu0 %v404_v9  ;;  %380 = vmatpush3.bf16.msra.mxu1 %v412_v17 }
  0x40   :  { %361 = vmatprep.subr.bf16.mxu0 %v508_v0  ;;  %381 = vmatprep.subr.bf16.mxu1 %v508_v0 }
  0x43   :  { %362 = vmatpush3.bf16.msra.mxu0 %v405_v11  ;;  %382 = vmatpush3.bf16.msra.mxu1 %v413_v18 }
  0x44   :  { %363 = vmatprep.subr.bf16.mxu0 %v508_v0  ;;  %383 = vmatprep.subr.bf16.mxu1 %v508_v0 }
  0x47   :  { %364 = vmatpush3.bf16.msra.mxu0 %v406_v13  ;;  %384 = vmatpush3.bf16.msra.mxu1 %v414_v19 }
  0x4a   :  { %366 = vmatmul.mubr.bf16.vlgmr.msra.gmra.mxu0 %v82_v16 }
 0x10a   :  { %v171_v21 = vpop.f32.mrf.mxu0 }
 0x10b   :  { %v172_v23 = vadd.f32 %v313_v20, %v171_v21 }
 0x10c   :  { %v367_v22 = vpop.f32.mrf.mxu0 }
 0x10d   :  { %v178_v27 = vmax.f32 %v172_v23, 0.0 }
 0x10e   :  { %v174_v24 = vpop.f32.mrf.mxu0 }
 0x10f   :  { %v175_v25 = vadd.f32 %v313_v20, %v174_v24 }
 0x110   :  { %v368_v26 = vpop.f32.mrf.mxu0 }
 0x111   :  { %v179_v28 = vmax.f32 %v175_v25, 0.0 }
 0x113   :  { %v197_v29 = vpack.c.bf16 %v179_v28, %v178_v27 }
 0x115   :  { %386 = vmatmul.mubr.bf16.vlgmr.msra.gmra.mxu1 %v197_v29 }
 0x1d5   :  { %v286_v31 = vpop.f32.mrf.mxu1 }
 0x1d6   :  { %v287_v32 = vadd.f32 %v322_v30, %v286_v31 }
 0x1d7   :  { %v387_v33 = vpop.f32.mrf.mxu1 }
 0x1d8   :  { %293 = vst [vmem:[#allocation8] sm:$0xff] %v287_v32 }
 0x1d9   :  { %v289_v34 = vpop.f32.mrf.mxu1 }
 0x1da   :  { %v290_v35 = vadd.f32 %v322_v30, %v289_v34 }
 0x1db   :  { %v388_v36 = vpop.f32.mrf.mxu1 }
 0x1dc   :  { %294 = vst [vmem:[#allocation8 + $0x8] sm:$0xff] %v290_v35 }
 0x1dd   :  { %486 = shalt.err (!%p483_p5)
}
 0x1de   :  { %306 = dma.vmem_to_hbm [thread:$0]  %s301_s14, 256, %s570_s5, [#allocation4], %s505_s28, %s505_s28, %s506_s29  }
 0x1df   :  { %499 = dma.done.wait [#allocation4], 256  }
 0x1e0   :  { %500 = vsyncadd [#allocation4], 4294967040 }
 0x1e1   :  { %310 = vsyncpa [#allocation3], 1 }
 0x1e2   :  { %311 = vsyncpa [#allocation6], 1 }
 0x1e3   :  { %312 = vsyncpa [#allocation4], 1 }

</bundles_post_ra>
